<compile_context>
chip_gen: v6e
topology: v6e:2x2x1
jax: 0.10.0
libtpu: 0.0.40
codegen_flags: <defaults>
</compile_context>

<pallas_src>
import functools

import jax
import jax.numpy as jnp
from jax.experimental import pallas as pl
from jax.experimental.pallas import tpu as pltpu


_HIDDEN = 256
_SUBLANE = 8               # sublane granule (rows)
_MEGACORE_SPLIT_MIN = 256  # split single-tile batches >= this into 2 tiles (v7x, 2 TCs)


def _round_up(x, m):
    return ((x + m - 1) // m) * m


def _cdiv(a, b):
    return -(-a // b)


def _actor_kernel(x_ref, w1_ref, b1_ref, w2_ref, b2_ref, w3_ref, b3_ref,
                  out_ref, *, max_action):
    # State tile (TILE_B, input_dim) -> bf16 for the MXU; f32 accumulation everywhere.
    x = x_ref[...].astype(jnp.bfloat16)

    # Layer 1: Linear + ReLU
    h1 = jnp.dot(x, w1_ref[...], preferred_element_type=jnp.float32) + b1_ref[...]
    h1 = jnp.maximum(h1, 0.0)

    # Layer 2: Linear + ReLU
    h2 = jnp.dot(h1.astype(jnp.bfloat16), w2_ref[...],
                 preferred_element_type=jnp.float32) + b2_ref[...]
    h2 = jnp.maximum(h2, 0.0)

    # Layer 3: Linear + tanh * max_action over the REAL action_dim columns only.
    y = jnp.dot(h2.astype(jnp.bfloat16), w3_ref[...],
                preferred_element_type=jnp.float32) + b3_ref[...]
    out_ref[...] = (max_action * jnp.tanh(y)).astype(out_ref.dtype)


def init_params(key, input_dim, hidden, action_dim):
    """PyTorch-Linear-style init (uniform +/- 1/sqrt(fan_in)), f32, stored as
    (in_features, out_features) so the kernel computes y = x @ W + b."""
    ks = jax.random.split(key, 6)

    def lin(kw, kb, fan_in, fan_out):
        bound = 1.0 / jnp.sqrt(fan_in)
        w = jax.random.uniform(kw, (fan_in, fan_out), jnp.float32, -bound, bound)
        b = jax.random.uniform(kb, (1, fan_out), jnp.float32, -bound, bound)
        return w, b

    w1, b1 = lin(ks[0], ks[1], input_dim, hidden)
    w2, b2 = lin(ks[2], ks[3], hidden, hidden)
    w3, b3 = lin(ks[4], ks[5], hidden, action_dim)
    return dict(w1=w1, b1=b1, w2=w2, b2=b2, w3=w3, b3=b3)


def pack_params(params):
    """Cast weights to bf16 (halves weight HBM traffic, native MXU rate); biases stay f32.
    No padding — kernel works on the real input_dim / action_dim."""
    return dict(
        w1=params["w1"].astype(jnp.bfloat16), b1=params["b1"].astype(jnp.float32),
        w2=params["w2"].astype(jnp.bfloat16), b2=params["b2"].astype(jnp.float32),
        w3=params["w3"].astype(jnp.bfloat16), b3=params["b3"].astype(jnp.float32),
    )


def delayed_actor_forward(state, packed, action_dim, max_action, *, tile_b=1024):
    """state: (B, input_dim) f32 (or bf16). Returns (B, action_dim) f32."""
    w1, b1 = packed["w1"], packed["b1"]
    w2, b2 = packed["w2"], packed["b2"]
    w3, b3 = packed["w3"], packed["b3"]

    B, K = state.shape
    hidden = w1.shape[1]
    assert w1.shape[0] == K and w3.shape[1] == action_dim

    # Batch padded only to the 8-row sublane granule; tiles are balanced so a batch
    # just over a tile multiple wastes < num_tiles*8 rows (no tail-tile blow-up).
    b8 = _round_up(B, _SUBLANE)
    tile_cap = max(_SUBLANE, min(_round_up(tile_b, _SUBLANE), b8))
    num_tiles = _cdiv(b8, tile_cap)
    # v7x megacore: if a medium/large batch would be a single grid step, split it into
    # 2 balanced tiles so ("parallel",) can shard across both TensorCores.
    if num_tiles == 1 and b8 >= _MEGACORE_SPLIT_MIN:
        num_tiles = 2
    tile_rows = _round_up(_cdiv(b8, num_tiles), _SUBLANE)
    b_pad = num_tiles * tile_rows

    x = state if b_pad == B else jnp.pad(state, ((0, b_pad - B), (0, 0)))

    # Advisory cost hint: lets XLA overlap the (dominant, tiny-batch) weight DMA / launch
    # with surrounding ops.
    flops = 2 * b_pad * (K * hidden + hidden * hidden + hidden * action_dim)
    bytes_accessed = int(
        x.size * x.dtype.itemsize
        + sum(int(a.size) * a.dtype.itemsize for a in (w1, b1, w2, b2, w3, b3))
        + b_pad * action_dim * 4)
    cost = pl.CostEstimate(flops=flops, transcendentals=b_pad * action_dim,
                           bytes_accessed=bytes_accessed)

    kernel = functools.partial(_actor_kernel, max_action=float(max_action))

    out = pl.pallas_call(
        kernel,
        out_shape=jax.ShapeDtypeStruct((b_pad, action_dim), jnp.float32),
        grid=(num_tiles,),
        in_specs=[
            pl.BlockSpec((tile_rows, K), lambda i: (i, 0)),       # state tiles pipeline
            pl.BlockSpec((K, hidden), lambda i: (0, 0)),          # weights stay VMEM-resident
            pl.BlockSpec((1, hidden), lambda i: (0, 0)),
            pl.BlockSpec((hidden, hidden), lambda i: (0, 0)),
            pl.BlockSpec((1, hidden), lambda i: (0, 0)),
            pl.BlockSpec((hidden, action_dim), lambda i: (0, 0)),
            pl.BlockSpec((1, action_dim), lambda i: (0, 0)),
        ],
        out_specs=pl.BlockSpec((tile_rows, action_dim), lambda i: (i, 0)),
        compiler_params=pltpu.CompilerParams(
            dimension_semantics=("parallel",),   # batch tiles independent -> v7x TC shard
        ),
        cost_estimate=cost,
    )(x, w1, b1, w2, b2, w3, b3)

    return out[:B] if b_pad != B else out


if __name__ == "__main__":
    # Module-consistent small shapes:
    # observation_space ~ two Box spaces with shape (8,), (8,):
    #   input_dim = (8 + 8) * 2 + action_dim = 36
    obs_dims = (8, 8)
    action_dim = 4
    max_action = 1.0
    input_dim = sum(obs_dims) * 2 + action_dim   # 36
    hidden = _HIDDEN
    batch = 2

    key = jax.random.PRNGKey(0)
    k_params, k_state = jax.random.split(key)

    params = init_params(k_params, input_dim, hidden, action_dim)
    packed = pack_params(params)
    state = jax.random.normal(k_state, (batch, input_dim), jnp.float32)

    out = delayed_actor_forward(state, packed, action_dim, max_action)
    out = jax.block_until_ready(out)
    assert out.shape == (batch, action_dim)

    # Reference 1: exact-dtype reference (same bf16 matmul operands, f32 accumulate).
    def bf16_ref(x):
        h = jnp.maximum(jnp.dot(x.astype(jnp.bfloat16), packed["w1"],
                                preferred_element_type=jnp.float32) + packed["b1"], 0.0)
        h = jnp.maximum(jnp.dot(h.astype(jnp.bfloat16), packed["w2"],
                                preferred_element_type=jnp.float32) + packed["b2"], 0.0)
        y = jnp.dot(h.astype(jnp.bfloat16), packed["w3"],
                    preferred_element_type=jnp.float32) + packed["b3"]
        return max_action * jnp.tanh(y)

    ref_bf16 = bf16_ref(state)
    assert jnp.allclose(out, ref_bf16, atol=2e-3, rtol=2e-3), "mismatch vs bf16 reference"

    # Reference 2: full-f32 reference of the original module (loose tol for bf16 weights).
    ref = jnp.maximum(state @ params["w1"] + params["b1"], 0.0)
    ref = jnp.maximum(ref @ params["w2"] + params["b2"], 0.0)
    ref = max_action * jnp.tanh(ref @ params["w3"] + params["b3"])
    assert jnp.allclose(out, ref, atol=3e-2, rtol=3e-2), "mismatch vs f32 reference"

    print("KERNEL_OK")
</pallas_src>

<mosaic_0001>
module attributes {stable_mosaic.version = 11 : i64} {
  func.func @_actor_kernel(%arg0: i32, %arg1: memref<8x36xf32, #tpu.memory_space<vmem>>, %arg2: memref<36x256xbf16, #tpu.memory_space<vmem>>, %arg3: memref<1x256xf32, #tpu.memory_space<vmem>>, %arg4: memref<256x256xbf16, #tpu.memory_space<vmem>>, %arg5: memref<1x256xf32, #tpu.memory_space<vmem>>, %arg6: memref<256x4xbf16, #tpu.memory_space<vmem>>, %arg7: memref<1x4xf32, #tpu.memory_space<vmem>>, %arg8: memref<8x4xf32, #tpu.memory_space<vmem>>) attributes {dimension_semantics = [#tpu.dimension_semantics<parallel>], iteration_bounds = array<i64: 1>, scalar_prefetch = 0 : i64, scratch_operands = 0 : i64, tpu.core_type = #tpu.core_type<tc>, window_params = [{transform_indices = @transform_0, window_bounds = array<i64: 8, 36>}, {pipeline_mode = #tpu.pipeline_mode<synchronous>, transform_indices = @transform_1, window_bounds = array<i64: 36, 256>}, {pipeline_mode = #tpu.pipeline_mode<synchronous>, transform_indices = @transform_2, window_bounds = array<i64: 1, 256>}, {pipeline_mode = #tpu.pipeline_mode<synchronous>, transform_indices = @transform_3, window_bounds = array<i64: 256, 256>}, {pipeline_mode = #tpu.pipeline_mode<synchronous>, transform_indices = @transform_4, window_bounds = array<i64: 1, 256>}, {pipeline_mode = #tpu.pipeline_mode<synchronous>, transform_indices = @transform_5, window_bounds = array<i64: 256, 4>}, {pipeline_mode = #tpu.pipeline_mode<synchronous>, transform_indices = @transform_6, window_bounds = array<i64: 1, 4>}, {transform_indices = @transform_7, window_bounds = array<i64: 8, 4>}]} {
    %c0 = arith.constant 0 : index
    %c0_0 = arith.constant 0 : index
    %0 = vector.load %arg1[%c0, %c0_0] : memref<8x36xf32, #tpu.memory_space<vmem>>, vector<8x36xf32>
    %1 = arith.truncf %0 : vector<8x36xf32> to vector<8x36xbf16>
    %c0_1 = arith.constant 0 : index
    %c0_2 = arith.constant 0 : index
    %2 = vector.load %arg2[%c0_1, %c0_2] : memref<36x256xbf16, #tpu.memory_space<vmem>>, vector<36x256xbf16>
    %cst = arith.constant dense<0.000000e+00> : vector<8x256xf32>
    %3 = tpu.matmul %1, %2, %cst {dimension_numbers = #tpu.dot_dimension_numbers<[1], [0], [0], [1], [0, 0, 1, 1], [], []>} : vector<8x36xbf16>, vector<36x256xbf16>, vector<8x256xf32> -> vector<8x256xf32>
    %c0_3 = arith.constant 0 : index
    %c0_4 = arith.constant 0 : index
    %4 = vector.load %arg3[%c0_3, %c0_4] : memref<1x256xf32, #tpu.memory_space<vmem>>, vector<1x256xf32>
    %5 = vector.broadcast %4 : vector<1x256xf32> to vector<8x256xf32>
    %6 = arith.addf %3, %5 : vector<8x256xf32>
    %cst_5 = arith.constant 0.000000e+00 : f32
    %7 = vector.broadcast %cst_5 : f32 to vector<8x256xf32>
    %8 = arith.maximumf %6, %7 : vector<8x256xf32>
    %9 = arith.truncf %8 : vector<8x256xf32> to vector<8x256xbf16>
    %c0_6 = arith.constant 0 : index
    %c0_7 = arith.constant 0 : index
    %10 = vector.load %arg4[%c0_6, %c0_7] : memref<256x256xbf16, #tpu.memory_space<vmem>>, vector<256x256xbf16>
    %cst_8 = arith.constant dense<0.000000e+00> : vector<8x256xf32>
    %11 = tpu.matmul %9, %10, %cst_8 {dimension_numbers = #tpu.dot_dimension_numbers<[1], [0], [0], [1], [0, 0, 1, 1], [], []>} : vector<8x256xbf16>, vector<256x256xbf16>, vector<8x256xf32> -> vector<8x256xf32>
    %c0_9 = arith.constant 0 : index
    %c0_10 = arith.constant 0 : index
    %12 = vector.load %arg5[%c0_9, %c0_10] : memref<1x256xf32, #tpu.memory_space<vmem>>, vector<1x256xf32>
    %13 = vector.broadcast %12 : vector<1x256xf32> to vector<8x256xf32>
    %14 = arith.addf %11, %13 : vector<8x256xf32>
    %cst_11 = arith.constant 0.000000e+00 : f32
    %15 = vector.broadcast %cst_11 : f32 to vector<8x256xf32>
    %16 = arith.maximumf %14, %15 : vector<8x256xf32>
    %17 = arith.truncf %16 : vector<8x256xf32> to vector<8x256xbf16>
    %c0_12 = arith.constant 0 : index
    %c0_13 = arith.constant 0 : index
    %18 = vector.load %arg6[%c0_12, %c0_13] : memref<256x4xbf16, #tpu.memory_space<vmem>>, vector<256x4xbf16>
    %cst_14 = arith.constant dense<0.000000e+00> : vector<8x4xf32>
    %19 = tpu.matmul %17, %18, %cst_14 {dimension_numbers = #tpu.dot_dimension_numbers<[1], [0], [0], [1], [0, 0, 1, 1], [], []>} : vector<8x256xbf16>, vector<256x4xbf16>, vector<8x4xf32> -> vector<8x4xf32>
    %c0_15 = arith.constant 0 : index
    %c0_16 = arith.constant 0 : index
    %20 = vector.load %arg7[%c0_15, %c0_16] : memref<1x4xf32, #tpu.memory_space<vmem>>, vector<1x4xf32>
    %21 = vector.broadcast %20 : vector<1x4xf32> to vector<8x4xf32>
    %22 = arith.addf %19, %21 : vector<8x4xf32>
    %23 = math.tanh %22 : vector<8x4xf32>
    %cst_17 = arith.constant 1.000000e+00 : f32
    %24 = vector.broadcast %cst_17 : f32 to vector<8x4xf32>
    %25 = arith.mulf %24, %23 : vector<8x4xf32>
    %c0_18 = arith.constant 0 : index
    %c0_19 = arith.constant 0 : index
    %26 = vector.load %arg8[%c0_18, %c0_19] : memref<8x4xf32, #tpu.memory_space<vmem>>, vector<8x4xf32>
    tpu.vector_store %arg8[%c0_18, %c0_19], %25 {strides = array<i32>} : memref<8x4xf32, #tpu.memory_space<vmem>>, vector<8x4xf32>,
    return
  }
  func.func @transform_0(%arg0: i32) -> (i32, i32) {
    %c0_i32 = arith.constant 0 : i32
    %c0_i32_0 = arith.constant 0 : i32
    return %arg0, %c0_i32 : i32, i32
  }
  func.func @transform_1(%arg0: i32) -> (i32, i32) {
    %c0_i32 = arith.constant 0 : i32
    %c0_i32_0 = arith.constant 0 : i32
    %c0_i32_1 = arith.constant 0 : i32
    return %c0_i32, %c0_i32_0 : i32, i32
  }
  func.func @transform_2(%arg0: i32) -> (i32, i32) {
    %c0_i32 = arith.constant 0 : i32
    %c0_i32_0 = arith.constant 0 : i32
    %c0_i32_1 = arith.constant 0 : i32
    return %c0_i32, %c0_i32_0 : i32, i32
  }
  func.func @transform_3(%arg0: i32) -> (i32, i32) {
    %c0_i32 = arith.constant 0 : i32
    %c0_i32_0 = arith.constant 0 : i32
    %c0_i32_1 = arith.constant 0 : i32
    return %c0_i32, %c0_i32_0 : i32, i32
  }
  func.func @transform_4(%arg0: i32) -> (i32, i32) {
    %c0_i32 = arith.constant 0 : i32
    %c0_i32_0 = arith.constant 0 : i32
    %c0_i32_1 = arith.constant 0 : i32
    return %c0_i32, %c0_i32_0 : i32, i32
  }
  func.func @transform_5(%arg0: i32) -> (i32, i32) {
    %c0_i32 = arith.constant 0 : i32
    %c0_i32_0 = arith.constant 0 : i32
    %c0_i32_1 = arith.constant 0 : i32
    return %c0_i32, %c0_i32_0 : i32, i32
  }
  func.func @transform_6(%arg0: i32) -> (i32, i32) {
    %c0_i32 = arith.constant 0 : i32
    %c0_i32_0 = arith.constant 0 : i32
    %c0_i32_1 = arith.constant 0 : i32
    return %c0_i32, %c0_i32_0 : i32, i32
  }
  func.func @transform_7(%arg0: i32) -> (i32, i32) {
    %c0_i32 = arith.constant 0 : i32
    %c0_i32_0 = arith.constant 0 : i32
    return %arg0, %c0_i32 : i32, i32
  }
}

</mosaic_0001>

<bundles_post_ra>
// kernel: tpu_custom_call.1
= control target key start
LH: loop header
LB: loop body
LE: loop exit
PB: predicated region body
PF: predicated region fallthrough
CT: control target
= control target key end

     0   :  { %12 = vsyncpa [#allocation3], 0  ;;  %s752_s24 = smov [#allocation2]   ;;  %s877_s0 = inlined_call_operand.vmem [shape: f32[8,36], index: 0, kind: input, shape index: {}]   ;;  %s878_s1 = inlined_call_operand.vmem [shape: bf16[36,256], index: 1, kind: input, shape index: {}]   ;;  %s879_s2 = inlined_call_operand.vmem [shape: f32[1,256], index: 2, kind: input, shape index: {}]   ;;  %s880_s3 = inlined_call_operand.hbm [shape: bf16[256,256], index: 3, kind: input, shape index: {}]   ;;  %s881_s4 = inlined_call_operand.vmem [shape: f32[1,256], index: 4, kind: input, shape index: {}]   ;;  %s882_s5 = inlined_call_operand.vmem [shape: bf16[256,4], index: 5, kind: input, shape index: {}]   ;;  %s883_s6 = inlined_call_operand.vmem [shape: f32[1,4], index: 6, kind: input, shape index: {}]   ;;  %s884_s7 = inlined_call_operand.vmem [shape: f32[8,4], index: 7, kind: output, shape index: {}]  }
   0x1   :  { %s24_s25 = sshll.u32 %s752_s24, 4  ;;  %s25_s25 = int_to_ptr.vmem [resolvable:$true] %s24_s25 }
   0x2   :  { %s738_s26 = scalar_lea.vmem %s25_s25, 4096  ;;  %p743_p1 = scmp.lt.s32.totalorder %s25_s25, %s25_s25 }
   0x3   :  { %p739_p0 = scmp.ne.s32.totalorder %s25_s25, %s738_s26  ;;  %p744_p2 = scmp.lt.s32.totalorder %s738_s26, %s738_s26 }
   0x5   :  { %p745_p3 = por %p744_p2, %p743_p1 }
   0x7   :  { %p746_p4 = pnand %p745_p3, %p739_p0 }
   0x9   :  { %749 = shalt.err (!%p746_p4)
}
   0xa   :  { %s753_s27 = smov 128   ;;  %s754_s28 = smov 8  }
   0xb   :  { %30 = dma.hbm_to_vmem [thread:$0]  %s880_s3, 4096, %s25_s25, [#allocation3], %s753_s27, %s753_s27, %s754_s28  }
   0xc   :  { %750 = dma.done.wait [#allocation3], 4096  }
   0xd   :  { %751 = vsyncadd [#allocation3], 4294963200  ;;  %v755_v0 = vmov 0   ;;  %v47_v1 = vld [vmem:[%s878_s1 + $0x20] sm:$0x33]  ;;  %vm89_vm0 = vcmask 1041408   ;;  %v50_v55 = vlaneseq }
   0xe   :  { %128 = vmatprep.mubr.bf16.mxu0 %v755_v0  ;;  %v578_v2 = vcombine.high %v47_v1, %v47_v1  ;;  %v577_v3 = vcombine.low %v47_v1, %v47_v1  ;;  %v658_v4 = vld [vmem:[%s878_s1 + $0x14] ss:$8 sps:$4 sm:$0xff]   ;;  %v660_v6 = vld [vmem:[%s878_s1 + $0x10] ss:$8 sps:$4 sm:$0xff]   ;;  %v661_v9 = vld [vmem:[%s878_s1 + $0x4] ss:$8 sps:$4 sm:$0xff]  }
   0xf   :  { %v664_v7 = vld [vmem:[#allocation2 + $0x74] ss:$8 sps:$4 sm:$0xff]   ;;  %v666_v8 = vld [vmem:[#allocation2 + $0x70] ss:$8 sps:$4 sm:$0xff]   ;;  %v667_v10 = vld [vmem:[#allocation2 + $0x64] ss:$8 sps:$4 sm:$0xff]  }
  0x10   :  { %579 = vmatprep.subr.msk.bf16.mxu0 %vm89_vm0, %v578_v2  ;;  %v91_v5 = vsel %vm89_vm0, %v577_v3, 0  ;;  %v663_v11 = vld [vmem:[%s878_s1] ss:$8 sps:$4 sm:$0xff]   ;;  %345 = vmatprep.subr.bf16.mxu1 %v664_v7  ;;  %v670_v14 = vld [vmem:[#allocation2 + $0x54] ss:$8 sps:$4 sm:$0xff]   ;;  %vm85_vm1 = vcmask 293888  }
  0x11   :  { %107 = vmatpush1.bf16.msra.mxu0 %v91_v5  ;;  %346 = vmatpush1.bf16.msra.mxu1 %v666_v8  ;;  %v669_v12 = vld [vmem:[#allocation2 + $0x60] ss:$8 sps:$4 sm:$0xff]   ;;  %v672_v16 = vld [vmem:[#allocation2 + $0x50] ss:$8 sps:$4 sm:$0xff]   ;;  %v673_v17 = vld [vmem:[#allocation2 + $0x44] ss:$8 sps:$4 sm:$0xff]  }
  0x12   :  { %108 = vmatprep.subr.bf16.mxu0 %v658_v4  ;;  %v41_v13 = vld [vmem:[%s877_s0] sm:$0xff]  ;;  %347 = vmatprep.subr.bf16.mxu1 %v667_v10  ;;  %v676_v19 = vld [vmem:[#allocation2 + $0x34] ss:$8 sps:$4 sm:$0xff]   ;;  %v678_v20 = vld [vmem:[#allocation2 + $0x30] ss:$8 sps:$4 sm:$0xff]   ;;  %v51_v56 = vshrl.u32 %v50_v55, 7 }
  0x13   :  { %v42_v15 = vpack.c.bf16 %v41_v13, %v41_v13  ;;  %v675_v18 = vld [vmem:[#allocation2 + $0x40] ss:$8 sps:$4 sm:$0xff]   ;;  %v679_v21 = vld [vmem:[#allocation2 + $0x24] ss:$8 sps:$4 sm:$0xff]   ;;  %v682_v23 = vld [vmem:[#allocation2 + $0x14] ss:$8 sps:$4 sm:$0xff]  }
  0x14   :  { %v681_v22 = vld [vmem:[#allocation2 + $0x20] ss:$8 sps:$4 sm:$0xff]   ;;  %v684_v24 = vld [vmem:[#allocation2 + $0x10] ss:$8 sps:$4 sm:$0xff]   ;;  %v685_v25 = vld [vmem:[#allocation2 + $0x4] ss:$8 sps:$4 sm:$0xff]  }
  0x15   :  { %109 = vmatpush1.bf16.msra.mxu0 %v660_v6  ;;  %348 = vmatpush1.bf16.msra.mxu1 %v669_v12  ;;  %v687_v26 = vld [vmem:[#allocation2] ss:$8 sps:$4 sm:$0xff]   ;;  %v688_v27 = vld [vmem:[#allocation2 + $0xf4] ss:$8 sps:$4 sm:$0xff]   ;;  %v690_v28 = vld [vmem:[#allocation2 + $0xf0] ss:$8 sps:$4 sm:$0xff]  }
  0x16   :  { %110 = vmatprep.subr.bf16.mxu0 %v661_v9  ;;  %349 = vmatprep.subr.bf16.mxu1 %v670_v14  ;;  %v691_v29 = vld [vmem:[#allocation2 + $0xe4] ss:$8 sps:$4 sm:$0xff]   ;;  %v693_v30 = vld [vmem:[#allocation2 + $0xe0] ss:$8 sps:$4 sm:$0xff]   ;;  %v694_v31 = vld [vmem:[#allocation2 + $0xd4] ss:$8 sps:$4 sm:$0xff]  }
  0x17   :  { %v696_v32 = vld [vmem:[#allocation2 + $0xd0] ss:$8 sps:$4 sm:$0xff]   ;;  %v697_v33 = vld [vmem:[#allocation2 + $0xc4] ss:$8 sps:$4 sm:$0xff]   ;;  %v699_v34 = vld [vmem:[#allocation2 + $0xc0] ss:$8 sps:$4 sm:$0xff]  }
  0x18   :  { %v700_v35 = vld [vmem:[#allocation2 + $0xb4] ss:$8 sps:$4 sm:$0xff]   ;;  %v702_v36 = vld [vmem:[#allocation2 + $0xb0] ss:$8 sps:$4 sm:$0xff]   ;;  %v703_v37 = vld [vmem:[#allocation2 + $0xa4] ss:$8 sps:$4 sm:$0xff]  }
  0x19   :  { %111 = vmatpush1.bf16.msra.mxu0 %v663_v11  ;;  %350 = vmatpush1.bf16.msra.mxu1 %v672_v16  ;;  %v705_v38 = vld [vmem:[#allocation2 + $0xa0] ss:$8 sps:$4 sm:$0xff]   ;;  %v706_v39 = vld [vmem:[#allocation2 + $0x94] ss:$8 sps:$4 sm:$0xff]   ;;  %v708_v40 = vld [vmem:[#allocation2 + $0x90] ss:$8 sps:$4 sm:$0xff]  }
  0x1a   :  { %351 = vmatprep.subr.bf16.mxu1 %v673_v17  ;;  %v709_v41 = vld [vmem:[#allocation2 + $0x84] ss:$8 sps:$4 sm:$0xff]   ;;  %v711_v42 = vld [vmem:[#allocation2 + $0x80] ss:$8 sps:$4 sm:$0xff]   ;;  %v712_v43 = vld [vmem:[%s882_s5 + $0x78] sm:$0xff]   ;;  %v52_v57 = vsub.s32 0, %v51_v56 }
  0x1b   :  { %v713_v44 = vld [vmem:[%s882_s5 + $0x38] sm:$0xff]   ;;  %v714_v45 = vld [vmem:[%s882_s5 + $0x70] sm:$0xff]   ;;  %630 = vmatprep.subr.bf16.mxu0 %v712_v43  ;;  %v716_v47 = vld [vmem:[%s882_s5 + $0x68] sm:$0xff]   ;;  %v56_v59 = vsub.s32 1, %v51_v56  ;;  %vm566_vm2 = vcmask 31744  }
  0x1c   :  { %580 = vmatmul.mubr.msk.bf16.vlgmr.msra.gmra.mxu0 %vm85_vm1, %v42_v15  ;;  %v715_v46 = vld [vmem:[%s882_s5 + $0x30] sm:$0xff]   ;;  %v717_v48 = vld [vmem:[%s882_s5 + $0x28] sm:$0xff]   ;;  %v718_v49 = vld [vmem:[%s882_s5 + $0x60] sm:$0xff]  }
  0x1d   :  { %352 = vmatpush1.bf16.msra.mxu1 %v675_v18  ;;  %631 = vmatpush3.bf16.msra.mxu0 %v713_v44  ;;  %v719_v50 = vld [vmem:[%s882_s5 + $0x20] sm:$0xff]   ;;  %v720_v51 = vld [vmem:[%s882_s5 + $0x58] sm:$0xff]   ;;  %v722_v53 = vld [vmem:[%s882_s5 + $0x50] sm:$0xff]  }
  0x1e   :  { %353 = vmatprep.subr.bf16.mxu1 %v676_v19  ;;  %632 = vmatprep.subr.bf16.mxu0 %v714_v45  ;;  %v721_v52 = vld [vmem:[%s882_s5 + $0x18] sm:$0xff]   ;;  %v723_v54 = vld [vmem:[%s882_s5 + $0x10] sm:$0xff]   ;;  %v48_v58 = vld [vmem:[%s879_s2] sm:$0x3] }
  0x1f   :  { %v53_v60 = vrot.slane %v48_v58, %v52_v57  ;;  %v57_v61 = vrot.slane %v48_v58, %v56_v59  ;;  %v724_v8 = vld [vmem:[%s882_s5 + $0x48] sm:$0xff]   ;;  %v726_v10 = vld [vmem:[%s882_s5 + $0x40] sm:$0xff]  }
  0x20   :  { %v725_v9 = vld [vmem:[%s882_s5 + $0x8] sm:$0xff]   ;;  %v727_v11 = vld [vmem:[%s882_s5] sm:$0xff]  }
  0x21   :  { %354 = vmatpush1.bf16.msra.mxu1 %v678_v20  ;;  %633 = vmatpush3.bf16.msra.mxu0 %v715_v46  ;;  %v173_v12 = vld [vmem:[%s881_s4] sm:$0x3] }
  0x22   :  { %355 = vmatprep.subr.bf16.mxu1 %v679_v21  ;;  %634 = vmatprep.subr.bf16.mxu0 %v716_v47  ;;  %v178_v13 = vrot.slane %v173_v12, %v52_v57  ;;  %v182_v14 = vrot.slane %v173_v12, %v56_v59 }
  0x25   :  { %356 = vmatpush1.bf16.msra.mxu1 %v681_v22  ;;  %635 = vmatpush3.bf16.msra.mxu0 %v717_v48 }
  0x26   :  { %357 = vmatprep.subr.bf16.mxu1 %v682_v23  ;;  %636 = vmatprep.subr.bf16.mxu0 %v718_v49 }
  0x29   :  { %358 = vmatpush1.bf16.msra.mxu1 %v684_v24  ;;  %637 = vmatpush3.bf16.msra.mxu0 %v719_v50 }
  0x2a   :  { %359 = vmatprep.subr.bf16.mxu1 %v685_v25  ;;  %638 = vmatprep.subr.bf16.mxu0 %v720_v51 }
  0x2d   :  { %360 = vmatpush1.bf16.msra.mxu1 %v687_v26  ;;  %639 = vmatpush3.bf16.msra.mxu0 %v721_v52  ;;  %v613_v26 = vld [vmem:[%s883_s6] ss:$0 sm:$0xff] }
  0x2e   :  { %361 = vmatprep.subr.bf16.mxu1 %v688_v27  ;;  %640 = vmatprep.subr.bf16.mxu0 %v722_v53 }
  0x31   :  { %362 = vmatpush2.bf16.msra.mxu1 %v690_v28  ;;  %641 = vmatpush3.bf16.msra.mxu0 %v723_v54 }
  0x32   :  { %363 = vmatprep.subr.bf16.mxu1 %v691_v29  ;;  %642 = vmatprep.subr.bf16.mxu0 %v724_v8 }
  0x35   :  { %364 = vmatpush2.bf16.msra.mxu1 %v693_v30  ;;  %643 = vmatpush3.bf16.msra.mxu0 %v725_v9 }
  0x36   :  { %365 = vmatprep.subr.bf16.mxu1 %v694_v31  ;;  %644 = vmatprep.subr.bf16.mxu0 %v726_v10 }
  0x39   :  { %366 = vmatpush2.bf16.msra.mxu1 %v696_v32  ;;  %645 = vmatpush3.bf16.msra.mxu0 %v727_v11 }
  0x3a   :  { %367 = vmatprep.subr.bf16.mxu1 %v697_v33 }
  0x3d   :  { %368 = vmatpush2.bf16.msra.mxu1 %v699_v34 }
  0x3e   :  { %369 = vmatprep.subr.bf16.mxu1 %v700_v35 }
  0x41   :  { %370 = vmatpush2.bf16.msra.mxu1 %v702_v36 }
  0x42   :  { %371 = vmatprep.subr.bf16.mxu1 %v703_v37 }
  0x45   :  { %372 = vmatpush2.bf16.msra.mxu1 %v705_v38 }
  0x46   :  { %373 = vmatprep.subr.bf16.mxu1 %v706_v39 }
  0x49   :  { %374 = vmatpush2.bf16.msra.mxu1 %v708_v40 }
  0x4a   :  { %375 = vmatprep.subr.bf16.mxu1 %v709_v41 }
  0x4d   :  { %376 = vmatpush2.bf16.msra.mxu1 %v711_v42 }
  0xdc   :  { %v130_v62 = vpop.f32.mrf.mxu0 }
  0xdd   :  { %v131_v63 = vadd.f32 %v130_v62, %v53_v60 }
  0xde   :  { %v132_v0 = vpop.f32.mrf.mxu0 }
  0xdf   :  { %v133_v1 = vadd.f32 %v132_v0, %v57_v61  ;;  %v137_v2 = vmax.f32 %v131_v63, 0.0 }
  0xe0   :  { %v134_v3 = vpop.f32.mrf.mxu0 }
  0xe1   :  { %v138_v4 = vmax.f32 %v133_v1, 0.0  ;;  %v139_v7 = vpack.c.bf16 %v137_v2, %v137_v2 }
  0xe2   :  { %v135_v5 = vpop.f32.mrf.mxu0 }
  0xe3   :  { %v140_v6 = vpack.c.bf16 %v138_v4, %v138_v4 }
  0xe5   :  { %377 = vmatprep.mubr.bf16.mxu1 %v140_v6 }
  0xe6   :  { %378 = vmatmul.mubr.bf16.vlgmr.msra.gmra.mxu1 %v139_v7 }
 0x1a6   :  { %v379_v15 = vpop.f32.mrf.mxu1 }
 0x1a7   :  { %v380_v16 = vadd.f32 %v379_v15, %v178_v13 }
 0x1a8   :  { %v381_v17 = vpop.f32.mrf.mxu1 }
 0x1a9   :  { %v382_v18 = vadd.f32 %v381_v17, %v182_v14  ;;  %v386_v19 = vmax.f32 %v380_v16, 0.0 }
 0x1aa   :  { %v383_v20 = vpop.f32.mrf.mxu1 }
 0x1ab   :  { %v387_v21 = vmax.f32 %v382_v18, 0.0  ;;  %v388_v24 = vpack.c.bf16 %v386_v19, %v386_v19 }
 0x1ac   :  { %v384_v22 = vpop.f32.mrf.mxu1 }
 0x1ad   :  { %v389_v23 = vpack.c.bf16 %v387_v21, %v387_v21 }
 0x1af   :  { %557 = vmatprep.mubr.bf16.mxu0 %v389_v23 }
 0x1b0   :  { %558 = vmatmul.mubr.bf16.vlgmr.msra.gmra.mxu0 %v388_v24 }
 0x270   :  { %v646_v25 = vpop.f32.mrf.mxu0 }
 0x272   :  { %v647_v27 = vpop.f32.mrf.mxu0 }
 0x273   :  { %v648_v28 = vadd.f32 %v647_v27, %v646_v25 }
 0x274   :  { %v649_v29 = vpop.f32.mrf.mxu0 }
 0x275   :  { %v560_v30 = vadd.f32 %v648_v28, %v613_v26 }
 0x276   :  { %v650_v31 = vpop.f32.mrf.mxu0 }
 0x277   :  { %728 = vtanh.f32 %v560_v30 }
 0x284   :  { %v729_v32 = vpop.eup %728 }
 0x285   :  { %567 = vst.msk [vmem:[%s884_s7] sm:$0xff] %vm566_vm2, %v729_v32 }
 0x286   :  { %572 = vsyncpa [#allocation3], 1 }

</bundles_post_ra>
